<compile_context>
chip_gen: v6e
topology: v6e:2x2x1
jax: 0.10.0
libtpu: 0.0.40
codegen_flags: <defaults>
</compile_context>

<pallas_src>
import functools

import jax
import jax.numpy as jnp
from jax.experimental import pallas as pl
from jax.experimental.pallas import tpu as pltpu


_VMEM_LIMIT_BYTES = 64 * 1024 * 1024  # raise scoped VMEM; safe on v5e/v6e/v7x


def _row_tile(n, target=512):
    """Row-tile size: full array if small, else a 512-row tile (multiple of 8).

    Per-generation note: v6e can profitably go to 1024 (128 MiB VMEM, HBM-bound);
    v5e prefers <=256 unless vmem_limit is raised; 512 is a safe middle ground.
    """
    return n if n <= target else target


# ------------------------------------------------------------------
# Kernel 1: dense projection  y = x @ Wt + b   (Wt pre-transposed to (din, dout))
# ------------------------------------------------------------------
def _linear_kernel(x_ref, wt_ref, b_ref, o_ref):
    y = jnp.dot(x_ref[...], wt_ref[...], preferred_element_type=jnp.float32)
    o_ref[...] = (y + b_ref[...]).astype(o_ref.dtype)


def _linear_call(x2d, wt, b2d):
    n, din = x2d.shape
    dout = wt.shape[1]
    tm = _row_tile(n)
    return pl.pallas_call(
        _linear_kernel,
        out_shape=jax.ShapeDtypeStruct((n, dout), x2d.dtype),
        grid=(pl.cdiv(n, tm),),
        in_specs=[
            pl.BlockSpec((tm, din), lambda i: (i, 0)),     # streamed activation rows
            pl.BlockSpec((din, dout), lambda i: (0, 0)),   # VMEM-resident weight (K x N)
            pl.BlockSpec((1, dout), lambda i: (0, 0)),     # VMEM-resident bias
        ],
        out_specs=pl.BlockSpec((tm, dout), lambda i: (i, 0)),
        compiler_params=pltpu.CompilerParams(
            dimension_semantics=("parallel",),
            vmem_limit_bytes=_VMEM_LIMIT_BYTES),
    )(x2d, wt, b2d)


def linear(x2d, w, b):
    """torch nn.Linear: y = x @ W^T + b, with W stored (dout, din)."""
    dout = w.shape[0]
    wt = jnp.transpose(w)                 # one-time relayout, outside the kernel grid
    return _linear_call(x2d, wt, b.reshape(1, dout))


def fused_qkv(x2d, wq, bq, wk, bk, wv, bv):
    """Self-attention fast path: one pass over x with a concatenated (din, 3*dout) weight."""
    dout = wq.shape[0]
    wt = jnp.transpose(jnp.concatenate([wq, wk, wv], axis=0))       # (din, 3*dout)
    b2d = jnp.concatenate([bq, bk, bv]).reshape(1, 3 * dout)
    out = _linear_call(x2d, wt, b2d)
    return out[:, :dout], out[:, dout:2 * dout], out[:, 2 * dout:]


# ------------------------------------------------------------------
# Kernel 2: scaled dot-product attention, (batch, q-tile) grid, all H heads per step
# ------------------------------------------------------------------
def _sdpa_kernel(*refs, scale, has_mask):
    if has_mask:
        q_ref, k_ref, v_ref, m_ref, ctx_ref, attn_ref = refs
    else:
        q_ref, k_ref, v_ref, ctx_ref, attn_ref = refs

    q = q_ref[...] * scale                               # scale folded onto the small Q tile
    # scores: batched over heads, contraction on trailing head-dim (no transpose relayout)
    s = jax.lax.dot_general(q, k_ref[...], (((2,), (2,)), ((0,), (0,))),
                            preferred_element_type=jnp.float32)        # (H, tq, Lk)
    if has_mask:
        s = jnp.where(m_ref[...] != 0, -jnp.inf, s)      # torch masked_fill_(mask, -inf)

    m = jnp.max(s, axis=-1, keepdims=True)
    p = jnp.exp(s - m)
    p = p / jnp.sum(p, axis=-1, keepdims=True)           # exact: attention rows sum to 1
    attn_ref[...] = p.astype(attn_ref.dtype)

    ctx = jax.lax.dot_general(p.astype(v_ref.dtype), v_ref[...],
                              (((2,), (1,)), ((0,), (0,))),
                              preferred_element_type=jnp.float32)      # (H, tq, d)
    ctx_ref[...] = ctx.astype(ctx_ref.dtype)


def sdpa(q, k, v, num_heads, scale, attn_mask=None, q_tile=256):
    bh, lq, d = q.shape
    lk = k.shape[1]
    b = bh // num_heads
    tq = lq if lq <= q_tile else q_tile
    has_mask = attn_mask is not None
    kern = functools.partial(_sdpa_kernel, scale=scale, has_mask=has_mask)

    in_specs = [
        pl.BlockSpec((num_heads, tq, d), lambda i, j: (i, j, 0)),
        pl.BlockSpec((num_heads, lk, d), lambda i, j: (i, 0, 0)),
        pl.BlockSpec((num_heads, lk, d), lambda i, j: (i, 0, 0)),
    ]
    args = [q, k, v]
    if has_mask:
        in_specs.append(pl.BlockSpec((num_heads, tq, lk), lambda i, j: (i, j, 0)))
        args.append(attn_mask)

    return pl.pallas_call(
        kern,
        out_shape=(
            jax.ShapeDtypeStruct((bh, lq, d), q.dtype),    # context
            jax.ShapeDtypeStruct((bh, lq, lk), q.dtype),   # attention weights
        ),
        grid=(b, pl.cdiv(lq, tq)),
        in_specs=in_specs,
        out_specs=(
            pl.BlockSpec((num_heads, tq, d), lambda i, j: (i, j, 0)),
            pl.BlockSpec((num_heads, tq, lk), lambda i, j: (i, j, 0)),
        ),
        compiler_params=pltpu.CompilerParams(
            dimension_semantics=("parallel", "parallel"),
            vmem_limit_bytes=_VMEM_LIMIT_BYTES),
    )(*args)


# ------------------------------------------------------------------
# Kernel 3: final projection + residual add + LayerNorm (fused, row-tiled)
# ------------------------------------------------------------------
def _final_kernel(ctx_ref, res_ref, wt_ref, b_ref, g_ref, beta_ref, o_ref, *, eps):
    y = jnp.dot(ctx_ref[...], wt_ref[...], preferred_element_type=jnp.float32)
    x = res_ref[...].astype(jnp.float32) + (y + b_ref[...])   # residual + (dropout == identity)
    mu = jnp.mean(x, axis=-1, keepdims=True)
    var = jnp.mean((x - mu) ** 2, axis=-1, keepdims=True)
    xn = (x - mu) * jax.lax.rsqrt(var + eps)
    o_ref[...] = (xn * g_ref[...] + beta_ref[...]).astype(o_ref.dtype)


def final_block(ctx2d, res2d, w, b, gamma, beta, eps=1e-5):
    n, din = ctx2d.shape
    dout = w.shape[0]
    tm = _row_tile(n)
    wt = jnp.transpose(w)
    kern = functools.partial(_final_kernel, eps=eps)
    return pl.pallas_call(
        kern,
        out_shape=jax.ShapeDtypeStruct((n, dout), ctx2d.dtype),
        grid=(pl.cdiv(n, tm),),
        in_specs=[
            pl.BlockSpec((tm, din), lambda i: (i, 0)),
            pl.BlockSpec((tm, dout), lambda i: (i, 0)),
            pl.BlockSpec((din, dout), lambda i: (0, 0)),
            pl.BlockSpec((1, dout), lambda i: (0, 0)),
            pl.BlockSpec((1, dout), lambda i: (0, 0)),
            pl.BlockSpec((1, dout), lambda i: (0, 0)),
        ],
        out_specs=pl.BlockSpec((tm, dout), lambda i: (i, 0)),
        compiler_params=pltpu.CompilerParams(
            dimension_semantics=("parallel",),
            vmem_limit_bytes=_VMEM_LIMIT_BYTES),
    )(ctx2d, res2d, wt,
      b.reshape(1, dout), gamma.reshape(1, dout), beta.reshape(1, dout))


# ------------------------------------------------------------------
# MultiHeadAttention forward
# ------------------------------------------------------------------
def multi_head_attention(key, value, query, params, num_heads, attn_mask=None):
    B, Lq, D = query.shape
    Lk = key.shape[1]
    Lv = value.shape[1]
    d = D // num_heads

    residual = query

    if (key is query) and (key is value):
        # self-attention: one fused projection pass over the shared input
        q2, k2, v2 = fused_qkv(query.reshape(B * Lq, D),
                               params["wq"], params["bq"],
                               params["wk"], params["bk"],
                               params["wv"], params["bv"])
    else:
        k2 = linear(key.reshape(B * Lk, D), params["wk"], params["bk"])
        v2 = linear(value.reshape(B * Lv, D), params["wv"], params["bv"])
        q2 = linear(query.reshape(B * Lq, D), params["wq"], params["bq"])

    # exact equivalent of torch .view(batch*num_heads, -1, dim_per_head)
    k3 = k2.reshape(B * num_heads, -1, d)
    v3 = v2.reshape(B * num_heads, -1, d)
    q3 = q2.reshape(B * num_heads, -1, d)

    mask_rep = None
    if attn_mask is not None:
        # torch: attn_mask.repeat(num_heads, 1, 1)  -> tiled along the batch*head axis
        mask_rep = jnp.tile(attn_mask.astype(jnp.float32), (num_heads, 1, 1))

    scale = float(d) ** (-0.5)
    context, attention = sdpa(q3, k3, v3, num_heads, scale, attn_mask=mask_rep)

    context = context.reshape(B, -1, d * num_heads)       # torch .view(B, -1, D)

    out2d = final_block(
        context.reshape(B * Lq, D),
        residual.reshape(B * Lq, D),
        params["wo"], params["bo"], params["ln_g"], params["ln_b"],
    )
    output = out2d.reshape(B, Lq, D)
    return output, attention


# ------------------------------------------------------------------
# Demo
# ------------------------------------------------------------------
if __name__ == "__main__":
    B, L, D, H = 2, 8, 32, 8

    rng = jax.random.PRNGKey(0)
    ks = jax.random.split(rng, 12)

    def init_lin(kw, kb, dout, din):
        bound = 1.0 / (din ** 0.5)
        w = jax.random.uniform(kw, (dout, din), jnp.float32, -bound, bound)
        b = jax.random.uniform(kb, (dout,), jnp.float32, -bound, bound)
        return w, b

    wk, bk = init_lin(ks[0], ks[1], D, D)
    wq, bq = init_lin(ks[2], ks[3], D, D)
    wv, bv = init_lin(ks[4], ks[5], D, D)
    wo, bo = init_lin(ks[6], ks[7], D, D)
    params = dict(
        wk=wk, bk=bk, wq=wq, bq=bq, wv=wv, bv=bv, wo=wo, bo=bo,
        ln_g=jnp.ones((D,), jnp.float32), ln_b=jnp.zeros((D,), jnp.float32),
    )

    key_in = jax.random.normal(ks[8], (B, L, D), jnp.float32)
    value_in = jax.random.normal(ks[9], (B, L, D), jnp.float32)
    query_in = jax.random.normal(ks[10], (B, L, D), jnp.float32)

    # 1) cross-attention (separate projections)
    output, attention = multi_head_attention(key_in, value_in, query_in, params, H)
    jax.block_until_ready((output, attention))
    assert output.shape == (B, L, D)
    assert attention.shape == (B * H, L, L)
    assert bool(jnp.allclose(attention.sum(-1), 1.0, atol=1e-5))

    # 2) self-attention (fused QKV projection path)
    out_sa, attn_sa = multi_head_attention(query_in, query_in, query_in, params, H)
    jax.block_until_ready((out_sa, attn_sa))
    assert out_sa.shape == (B, L, D)
    assert attn_sa.shape == (B * H, L, L)

    # 3) self-attention with a causal attn_mask (1 = masked out)
    causal = jnp.broadcast_to(jnp.triu(jnp.ones((L, L), jnp.bool_), 1), (B, L, L))
    out_m, attn_m = multi_head_attention(query_in, query_in, query_in, params, H,
                                         attn_mask=causal)
    jax.block_until_ready((out_m, attn_m))
    assert out_m.shape == (B, L, D)
    assert attn_m.shape == (B * H, L, L)
    assert bool(jnp.all(jnp.isfinite(out_m)))

    print("KERNEL_OK")
</pallas_src>

<mosaic_0001>
module attributes {stable_mosaic.version = 11 : i64} {
  func.func @_linear_kernel(%arg0: i32, %arg1: memref<16x32xf32, #tpu.memory_space<vmem>>, %arg2: memref<32x32xf32, #tpu.memory_space<vmem>>, %arg3: memref<1x32xf32, #tpu.memory_space<vmem>>, %arg4: memref<16x32xf32, #tpu.memory_space<vmem>>) attributes {dimension_semantics = [#tpu.dimension_semantics<parallel>], iteration_bounds = array<i64: 1>, scalar_prefetch = 0 : i64, scratch_operands = 0 : i64, tpu.core_type = #tpu.core_type<tc>, window_params = [{transform_indices = @transform_0, window_bounds = array<i64: 16, 32>}, {pipeline_mode = #tpu.pipeline_mode<synchronous>, transform_indices = @transform_1, window_bounds = array<i64: 32, 32>}, {pipeline_mode = #tpu.pipeline_mode<synchronous>, transform_indices = @transform_2, window_bounds = array<i64: 1, 32>}, {transform_indices = @transform_3, window_bounds = array<i64: 16, 32>}]} {
    %c0 = arith.constant 0 : index
    %c0_0 = arith.constant 0 : index
    %0 = vector.load %arg1[%c0, %c0_0] : memref<16x32xf32, #tpu.memory_space<vmem>>, vector<16x32xf32>
    %c0_1 = arith.constant 0 : index
    %c0_2 = arith.constant 0 : index
    %1 = vector.load %arg2[%c0_1, %c0_2] : memref<32x32xf32, #tpu.memory_space<vmem>>, vector<32x32xf32>
    %cst = arith.constant dense<0.000000e+00> : vector<16x32xf32>
    %2 = tpu.matmul %0, %1, %cst {dimension_numbers = #tpu.dot_dimension_numbers<[1], [0], [0], [1], [0, 0, 1, 1], [], []>} : vector<16x32xf32>, vector<32x32xf32>, vector<16x32xf32> -> vector<16x32xf32>
    %c0_3 = arith.constant 0 : index
    %c0_4 = arith.constant 0 : index
    %3 = vector.load %arg3[%c0_3, %c0_4] : memref<1x32xf32, #tpu.memory_space<vmem>>, vector<1x32xf32>
    %4 = vector.broadcast %3 : vector<1x32xf32> to vector<16x32xf32>
    %5 = arith.addf %2, %4 : vector<16x32xf32>
    %c0_5 = arith.constant 0 : index
    %c0_6 = arith.constant 0 : index
    %6 = vector.load %arg4[%c0_5, %c0_6] : memref<16x32xf32, #tpu.memory_space<vmem>>, vector<16x32xf32>
    tpu.vector_store %arg4[%c0_5, %c0_6], %5 {strides = array<i32>} : memref<16x32xf32, #tpu.memory_space<vmem>>, vector<16x32xf32>,
    return
  }
  func.func @transform_0(%arg0: i32) -> (i32, i32) {
    %c0_i32 = arith.constant 0 : i32
    %c0_i32_0 = arith.constant 0 : i32
    return %arg0, %c0_i32 : i32, i32
  }
  func.func @transform_1(%arg0: i32) -> (i32, i32) {
    %c0_i32 = arith.constant 0 : i32
    %c0_i32_0 = arith.constant 0 : i32
    %c0_i32_1 = arith.constant 0 : i32
    return %c0_i32, %c0_i32_0 : i32, i32
  }
  func.func @transform_2(%arg0: i32) -> (i32, i32) {
    %c0_i32 = arith.constant 0 : i32
    %c0_i32_0 = arith.constant 0 : i32
    %c0_i32_1 = arith.constant 0 : i32
    return %c0_i32, %c0_i32_0 : i32, i32
  }
  func.func @transform_3(%arg0: i32) -> (i32, i32) {
    %c0_i32 = arith.constant 0 : i32
    %c0_i32_0 = arith.constant 0 : i32
    return %arg0, %c0_i32 : i32, i32
  }
}

</mosaic_0001>

<bundles_post_ra>
// kernel: tpu_custom_call.1
= control target key start
LH: loop header
LB: loop body
LE: loop exit
PB: predicated region body
PF: predicated region fallthrough
CT: control target
= control target key end

     0   :  { %8 = vsyncpa [#allocation3], 0  ;;  %s299_s0 = inlined_call_operand.hbm [shape: f32[16,32], index: 0, kind: input, shape index: {}]   ;;  %s300_s1 = inlined_call_operand.hbm [shape: f32[32,32], index: 1, kind: input, shape index: {}]   ;;  %s301_s2 = inlined_call_operand.vmem [shape: f32[1,32], index: 2, kind: input, shape index: {}]   ;;  %s302_s3 = inlined_call_operand.hbm [shape: f32[16,32], index: 3, kind: output, shape index: {}]  }
   0x1   :  { %9 = vsyncpa [#allocation6], 0 }
   0x2   :  { %10 = vsyncpa [#allocation4], 0  ;;  %s249_s12 = smov [#allocation2]  }
   0x3   :  { %s16_s13 = sshll.u32 %s249_s12, 4  ;;  %s17_s13 = int_to_ptr.vmem [resolvable:$true] %s16_s13 }
   0x4   :  { %s191_s14 = scalar_lea.vmem %s17_s13, 256  ;;  %p196_p1 = scmp.lt.s32.totalorder %s17_s13, %s17_s13 }
   0x5   :  { %p192_p0 = scmp.ne.s32.totalorder %s17_s13, %s191_s14  ;;  %p197_p2 = scmp.lt.s32.totalorder %s191_s14, %s191_s14 }
   0x7   :  { %p198_p3 = por %p197_p2, %p196_p1 }
   0x9   :  { %p199_p4 = pnand %p198_p3, %p192_p0 }
   0xb   :  { %202 = shalt.err (!%p199_p4)
}
   0xc   :  { %s250_s15 = smov 128   ;;  %s251_s16 = smov 8  }
   0xd   :  { %22 = dma.hbm_to_vmem [thread:$0]  %s299_s0, 256, %s17_s13, [#allocation3], %s250_s15, %s250_s15, %s251_s16  }
   0xe   :  { %s252_s19 = smov [#allocation5]  }
   0xf   :  { %s28_s20 = sshll.u32 %s252_s19, 4  ;;  %s29_s20 = int_to_ptr.vmem [resolvable:$true] %s28_s20 }
  0x10   :  { %s211_s21 = scalar_lea.vmem %s29_s20, 512  ;;  %p216_p6 = scmp.lt.s32.totalorder %s29_s20, %s29_s20 }
  0x11   :  { %p212_p5 = scmp.ne.s32.totalorder %s29_s20, %s211_s21  ;;  %p217_p7 = scmp.lt.s32.totalorder %s211_s21, %s211_s21 }
  0x13   :  { %p218_p8 = por %p217_p7, %p216_p6 }
  0x15   :  { %p219_p9 = pnand %p218_p8, %p212_p5 }
  0x17   :  { %222 = shalt.err (!%p219_p9)
}
  0x18   :  { %34 = dma.hbm_to_vmem [thread:$0]  %s300_s1, 512, %s29_s20, [#allocation6], %s250_s15, %s250_s15, %s251_s16  }
  0x19   :  { %243 = dma.done.wait [#allocation3], 256  }
  0x1a   :  { %244 = vsyncadd [#allocation3], 4294967040 }
  0x1b   :  { %245 = dma.done.wait [#allocation6], 512  }
  0x1c   :  { %246 = vsyncadd [#allocation6], 4294966784  ;;  %vm56_vm0 = vcmask 261120   ;;  %v48_v0 = vld [vmem:[#allocation5 + $0x18] sm:$0xff]  ;;  %v47_v1 = vld [vmem:[#allocation5 + $0x10] sm:$0xff]  ;;  %s253_s24 = smov [#allocation7]  }
  0x1d   :  { %167 = vmatprep.subr.mxu0 %v48_v0  ;;  %v43_v2 = vld [vmem:[#allocation2] sm:$0xff]  ;;  %v46_v3 = vld [vmem:[#allocation5 + $0x8] sm:$0xff]  ;;  %v45_v4 = vld [vmem:[#allocation5] sm:$0xff]  ;;  %s145_s25 = sshll.u32 %s253_s24, 4  ;;  %s146_s25 = int_to_ptr.vmem [resolvable:$true] %s145_s25 }
  0x1e   :  { %168 = vmatpush3.msra.mxu0 %v48_v0  ;;  %175 = vmatprep.mubr.msk.f32.mxu0 %vm56_vm0, %v43_v2  ;;  %v44_v5 = vld [vmem:[#allocation2 + $0x8] sm:$0xff]  ;;  %v158_v6 = vld [vmem:[%s301_s2] ss:$0 sm:$0xff]  ;;  %s223_s26 = scalar_lea.vmem %s146_s25, 256  ;;  %p228_p11 = scmp.lt.s32.totalorder %s146_s25, %s146_s25 }
  0x1f   :  { %169 = vmatprep.subr.mxu0 %v47_v1  ;;  %p224_p10 = scmp.ne.s32.totalorder %s146_s25, %s223_s26  ;;  %p229_p12 = scmp.lt.s32.totalorder %s223_s26, %s223_s26 }
  0x20   :  { %170 = vmatpush3.msra.mxu0 %v47_v1 }
  0x21   :  { %171 = vmatprep.subr.mxu0 %v46_v3  ;;  %p230_p13 = por %p229_p12, %p228_p11 }
  0x22   :  { %172 = vmatpush3.msra.mxu0 %v46_v3 }
  0x23   :  { %173 = vmatprep.subr.mxu0 %v45_v4  ;;  %p231_p0 = pnand %p230_p13, %p224_p10 }
  0x24   :  { %174 = vmatpush3.msra.mxu0 %v45_v4 }
  0x25   :  { %176 = vmatmul.mubr.msk.f32.vlgmr.msra.gmra.mxu0 %vm56_vm0, %v44_v5 }
  0xe5   :  { %v177_v7 = vpop.f32.mrf.mxu0 }
  0xe6   :  { %v135_v8 = vadd.f32 %v177_v7, %v158_v6 }
  0xe7   :  { %v129_v9 = vpop.f32.mrf.mxu0 }
  0xe8   :  { %139 = vst.msk [vmem:[#allocation7 + $0x8] sm:$0xff] %vm56_vm0, %v135_v8  ;;  %v130_v10 = vadd.f32 %v158_v6, %v129_v9 }
  0xea   :  { %138 = vst.msk [vmem:[#allocation7] sm:$0xff] %vm56_vm0, %v130_v10 }
  0xeb   :  { %234 = shalt.err (!%p231_p0)
}
  0xec   :  { %151 = dma.vmem_to_hbm [thread:$0]  %s146_s25, 256, %s302_s3, [#allocation4], %s250_s15, %s250_s15, %s251_s16  }
  0xed   :  { %247 = dma.done.wait [#allocation4], 256  }
  0xee   :  { %248 = vsyncadd [#allocation4], 4294967040 }
  0xef   :  { %155 = vsyncpa [#allocation3], 1 }
  0xf0   :  { %156 = vsyncpa [#allocation6], 1 }
  0xf1   :  { %157 = vsyncpa [#allocation4], 1 }

</bundles_post_ra>
